<compile_context>
chip_gen: v5e
topology: v5e:2x2
jax: 0.10.0
libtpu: 0.0.40
codegen_flags: <defaults>
</compile_context>

<pallas_src>
import jax
import jax.numpy as jnp
from jax.experimental import pallas as pl
from jax.experimental.pallas import tpu as pltpu


def _cdiv(a, b):
    return -(-a // b)


def mlp_kernel(x_ref, w1_ref, b1_ref, w2_ref, b2_ref, w3_ref, b3_ref,
               w4_ref, b4_ref, o_ref):
    """Lane-dense (features, batch) layer-major forward over one batch tile."""

    def layer(w_ref, b_ref, h, *, act=True):
        # One long matmul over the whole tile: weight staged once, streamed over
        # the full batch width.  f32 accumulation.
        z = jnp.dot(w_ref[...], h, preferred_element_type=jnp.float32) + b_ref[...]
        if act:
            # sigmoid(z) == 0.5 * tanh(0.5 * z) + 0.5  -> single EUP push.
            z = 0.5 * jnp.tanh(0.5 * z) + 0.5
        return z

    h = layer(w1_ref, b1_ref, x_ref[...])      # (10, block_b)
    h = layer(w2_ref, b2_ref, h)               # (10, block_b)
    h = layer(w3_ref, b3_ref, h)               # (8,  block_b)
    y = layer(w4_ref, b4_ref, h, act=False)    # (1,  block_b)
    o_ref[...] = y.astype(o_ref.dtype)         # lane-dense store


def _choose_block_b(B, *, max_block=32768, align=512):
    """Balanced-tail block size; >= 2 blocks for large B (v7x megacore)."""
    n_blocks = max(_cdiv(B, max_block), 2 if B >= 2 * align else 1)
    block_b = _cdiv(_cdiv(B, n_blocks), align) * align
    if block_b >= B:
        return B          # single block equal to the full array dim (always legal)
    return block_b


def mlp_forward(x, params, *, max_block=32768):
    """x: (B, 2) float32.  params: PyTorch-layout weights (out,in), biases (out,1)."""
    B = x.shape[0]
    block_b = _choose_block_b(B, max_block=max_block)
    n_blocks = _cdiv(B, block_b)

    # Lane-dense layout: batch on the 128-wide lane axis. Single transpose pass;
    # no padding (ragged tail handled by partial last blocks in the kernel).
    xt = jnp.transpose(x)                                  # (2, B)

    w1, b1 = params["w1"], params["b1"]
    w2, b2 = params["w2"], params["b2"]
    w3, b3 = params["w3"], params["b3"]
    w4, b4 = params["w4"], params["b4"]

    def full(a):
        # Full-array block with a constant index map: DMA'd once, reused across steps.
        return pl.BlockSpec(a.shape, lambda i: (0, 0))

    out_t = pl.pallas_call(
        mlp_kernel,
        out_shape=jax.ShapeDtypeStruct((1, B), x.dtype),
        grid_spec=pltpu.PrefetchScalarGridSpec(
            num_scalar_prefetch=0,
            grid=(n_blocks,),
            in_specs=[
                pl.BlockSpec((2, block_b), lambda i: (0, i)),   # x tile, batch on lanes
                full(w1), full(b1),
                full(w2), full(b2),
                full(w3), full(b3),
                full(w4), full(b4),
            ],
            out_specs=pl.BlockSpec((1, block_b), lambda i: (0, i)),
        ),
        compiler_params=pltpu.CompilerParams(
            dimension_semantics=("parallel",)),                 # shard steps on v7x's 2 TCs
    )(xt, w1, b1, w2, b2, w3, b3, w4, b4)

    return out_t.reshape(B, 1)                                  # (1,B) -> (B,1) is free


def init_params(key):
    """Deterministic PyTorch-style init.  Weights (out, in); biases (out, 1)."""
    dims = [(2, 10), (10, 10), (10, 8), (8, 1)]
    params = {}
    for idx, (fan_in, fan_out) in enumerate(dims, start=1):
        key, kw, kb = jax.random.split(key, 3)
        bound = 1.0 / jnp.sqrt(jnp.float32(fan_in))
        w = jax.random.uniform(kw, (fan_out, fan_in), jnp.float32, -bound, bound)
        b = jax.random.uniform(kb, (fan_out,), jnp.float32, -bound, bound)
        params[f"w{idx}"] = w                        # (out, in) — PyTorch layout
        params[f"b{idx}"] = b.reshape(fan_out, 1)    # (out, 1)
    return params


def reference_forward(x, params):
    h = jax.nn.sigmoid(x @ params["w1"].T + params["b1"][:, 0])
    h = jax.nn.sigmoid(h @ params["w2"].T + params["b2"][:, 0])
    h = jax.nn.sigmoid(h @ params["w3"].T + params["b3"][:, 0])
    return h @ params["w4"].T + params["b4"][:, 0]


if __name__ == "__main__":
    key = jax.random.PRNGKey(0)
    key, kx = jax.random.split(key)
    params = init_params(key)

    # Primary small-shape check (matches the module spec: (B, 2) inputs).
    B = 8
    x = jax.random.normal(kx, (B, 2), jnp.float32)
    out = jax.block_until_ready(mlp_forward(x, params))
    ref = reference_forward(x, params)
    assert out.shape == (B, 1)
    assert jnp.allclose(out, ref, atol=1e-5, rtol=1e-4), "mismatch vs reference (B=8)"

    # Secondary check: ragged batch exercising a partial tail block and a
    # 2-step "parallel" grid (work for both v7x TensorCores).
    key, kx2 = jax.random.split(key)
    B2 = 4500
    x2 = jax.random.normal(kx2, (B2, 2), jnp.float32)
    out2 = jax.block_until_ready(mlp_forward(x2, params))
    ref2 = reference_forward(x2, params)
    assert out2.shape == (B2, 1)
    assert jnp.allclose(out2, ref2, atol=1e-5, rtol=1e-4), "mismatch vs reference (B=4500)"

    print("KERNEL_OK")
</pallas_src>

<mosaic_0001>
module attributes {stable_mosaic.version = 11 : i64} {
  func.func @mlp_kernel(%arg0: i32, %arg1: memref<2x8xf32, #tpu.memory_space<vmem>>, %arg2: memref<10x2xf32, #tpu.memory_space<vmem>>, %arg3: memref<10x1xf32, #tpu.memory_space<vmem>>, %arg4: memref<10x10xf32, #tpu.memory_space<vmem>>, %arg5: memref<10x1xf32, #tpu.memory_space<vmem>>, %arg6: memref<8x10xf32, #tpu.memory_space<vmem>>, %arg7: memref<8x1xf32, #tpu.memory_space<vmem>>, %arg8: memref<1x8xf32, #tpu.memory_space<vmem>>, %arg9: memref<1x1xf32, #tpu.memory_space<vmem>>, %arg10: memref<1x8xf32, #tpu.memory_space<vmem>>) attributes {dimension_semantics = [#tpu.dimension_semantics<parallel>], iteration_bounds = array<i64: 1>, scalar_prefetch = 0 : i64, scratch_operands = 0 : i64, tpu.core_type = #tpu.core_type<tc>, window_params = [{transform_indices = @transform_0, window_bounds = array<i64: 2, 8>}, {pipeline_mode = #tpu.pipeline_mode<synchronous>, transform_indices = @transform_1, window_bounds = array<i64: 10, 2>}, {pipeline_mode = #tpu.pipeline_mode<synchronous>, transform_indices = @transform_2, window_bounds = array<i64: 10, 1>}, {pipeline_mode = #tpu.pipeline_mode<synchronous>, transform_indices = @transform_3, window_bounds = array<i64: 10, 10>}, {pipeline_mode = #tpu.pipeline_mode<synchronous>, transform_indices = @transform_4, window_bounds = array<i64: 10, 1>}, {pipeline_mode = #tpu.pipeline_mode<synchronous>, transform_indices = @transform_5, window_bounds = array<i64: 8, 10>}, {pipeline_mode = #tpu.pipeline_mode<synchronous>, transform_indices = @transform_6, window_bounds = array<i64: 8, 1>}, {pipeline_mode = #tpu.pipeline_mode<synchronous>, transform_indices = @transform_7, window_bounds = array<i64: 1, 8>}, {pipeline_mode = #tpu.pipeline_mode<synchronous>, transform_indices = @transform_8, window_bounds = array<i64: 1, 1>}, {transform_indices = @transform_9, window_bounds = array<i64: 1, 8>}]} {
    %c0 = arith.constant 0 : index
    %c0_0 = arith.constant 0 : index
    %0 = vector.load %arg1[%c0, %c0_0] : memref<2x8xf32, #tpu.memory_space<vmem>>, vector<2x8xf32>
    %c0_1 = arith.constant 0 : index
    %c0_2 = arith.constant 0 : index
    %1 = vector.load %arg2[%c0_1, %c0_2] : memref<10x2xf32, #tpu.memory_space<vmem>>, vector<10x2xf32>
    %cst = arith.constant dense<0.000000e+00> : vector<10x8xf32>
    %2 = tpu.matmul %1, %0, %cst {dimension_numbers = #tpu.dot_dimension_numbers<[1], [0], [0], [1], [0, 0, 1, 1], [], []>} : vector<10x2xf32>, vector<2x8xf32>, vector<10x8xf32> -> vector<10x8xf32>
    %c0_3 = arith.constant 0 : index
    %c0_4 = arith.constant 0 : index
    %3 = vector.load %arg3[%c0_3, %c0_4] : memref<10x1xf32, #tpu.memory_space<vmem>>, vector<10x1xf32>
    %4 = vector.broadcast %3 : vector<10x1xf32> to vector<10x8xf32>
    %5 = arith.addf %2, %4 : vector<10x8xf32>
    %cst_5 = arith.constant 5.000000e-01 : f32
    %6 = vector.broadcast %cst_5 : f32 to vector<10x8xf32>
    %7 = arith.mulf %6, %5 : vector<10x8xf32>
    %8 = math.tanh %7 : vector<10x8xf32>
    %cst_6 = arith.constant 5.000000e-01 : f32
    %9 = vector.broadcast %cst_6 : f32 to vector<10x8xf32>
    %10 = arith.mulf %9, %8 : vector<10x8xf32>
    %cst_7 = arith.constant 5.000000e-01 : f32
    %11 = vector.broadcast %cst_7 : f32 to vector<10x8xf32>
    %12 = arith.addf %10, %11 : vector<10x8xf32>
    %c0_8 = arith.constant 0 : index
    %c0_9 = arith.constant 0 : index
    %13 = vector.load %arg4[%c0_8, %c0_9] : memref<10x10xf32, #tpu.memory_space<vmem>>, vector<10x10xf32>
    %cst_10 = arith.constant dense<0.000000e+00> : vector<10x8xf32>
    %14 = tpu.matmul %13, %12, %cst_10 {dimension_numbers = #tpu.dot_dimension_numbers<[1], [0], [0], [1], [0, 0, 1, 1], [], []>} : vector<10x10xf32>, vector<10x8xf32>, vector<10x8xf32> -> vector<10x8xf32>
    %c0_11 = arith.constant 0 : index
    %c0_12 = arith.constant 0 : index
    %15 = vector.load %arg5[%c0_11, %c0_12] : memref<10x1xf32, #tpu.memory_space<vmem>>, vector<10x1xf32>
    %16 = vector.broadcast %15 : vector<10x1xf32> to vector<10x8xf32>
    %17 = arith.addf %14, %16 : vector<10x8xf32>
    %cst_13 = arith.constant 5.000000e-01 : f32
    %18 = vector.broadcast %cst_13 : f32 to vector<10x8xf32>
    %19 = arith.mulf %18, %17 : vector<10x8xf32>
    %20 = math.tanh %19 : vector<10x8xf32>
    %cst_14 = arith.constant 5.000000e-01 : f32
    %21 = vector.broadcast %cst_14 : f32 to vector<10x8xf32>
    %22 = arith.mulf %21, %20 : vector<10x8xf32>
    %cst_15 = arith.constant 5.000000e-01 : f32
    %23 = vector.broadcast %cst_15 : f32 to vector<10x8xf32>
    %24 = arith.addf %22, %23 : vector<10x8xf32>
    %c0_16 = arith.constant 0 : index
    %c0_17 = arith.constant 0 : index
    %25 = vector.load %arg6[%c0_16, %c0_17] : memref<8x10xf32, #tpu.memory_space<vmem>>, vector<8x10xf32>
    %cst_18 = arith.constant dense<0.000000e+00> : vector<8x8xf32>
    %26 = tpu.matmul %25, %24, %cst_18 {dimension_numbers = #tpu.dot_dimension_numbers<[1], [0], [0], [1], [0, 0, 1, 1], [], []>} : vector<8x10xf32>, vector<10x8xf32>, vector<8x8xf32> -> vector<8x8xf32>
    %c0_19 = arith.constant 0 : index
    %c0_20 = arith.constant 0 : index
    %27 = vector.load %arg7[%c0_19, %c0_20] : memref<8x1xf32, #tpu.memory_space<vmem>>, vector<8x1xf32>
    %28 = vector.broadcast %27 : vector<8x1xf32> to vector<8x8xf32>
    %29 = arith.addf %26, %28 : vector<8x8xf32>
    %cst_21 = arith.constant 5.000000e-01 : f32
    %30 = vector.broadcast %cst_21 : f32 to vector<8x8xf32>
    %31 = arith.mulf %30, %29 : vector<8x8xf32>
    %32 = math.tanh %31 : vector<8x8xf32>
    %cst_22 = arith.constant 5.000000e-01 : f32
    %33 = vector.broadcast %cst_22 : f32 to vector<8x8xf32>
    %34 = arith.mulf %33, %32 : vector<8x8xf32>
    %cst_23 = arith.constant 5.000000e-01 : f32
    %35 = vector.broadcast %cst_23 : f32 to vector<8x8xf32>
    %36 = arith.addf %34, %35 : vector<8x8xf32>
    %c0_24 = arith.constant 0 : index
    %c0_25 = arith.constant 0 : index
    %37 = vector.load %arg8[%c0_24, %c0_25] : memref<1x8xf32, #tpu.memory_space<vmem>>, vector<1x8xf32>
    %cst_26 = arith.constant dense<0.000000e+00> : vector<1x8xf32>
    %38 = tpu.matmul %37, %36, %cst_26 {dimension_numbers = #tpu.dot_dimension_numbers<[1], [0], [0], [1], [0, 0, 1, 1], [], []>} : vector<1x8xf32>, vector<8x8xf32>, vector<1x8xf32> -> vector<1x8xf32>
    %c0_27 = arith.constant 0 : index
    %c0_28 = arith.constant 0 : index
    %39 = vector.load %arg9[%c0_27, %c0_28] : memref<1x1xf32, #tpu.memory_space<vmem>>, vector<1x1xf32>
    %40 = vector.broadcast %39 : vector<1x1xf32> to vector<1x8xf32>
    %41 = arith.addf %38, %40 : vector<1x8xf32>
    %c0_29 = arith.constant 0 : index
    %c0_30 = arith.constant 0 : index
    %42 = vector.load %arg10[%c0_29, %c0_30] : memref<1x8xf32, #tpu.memory_space<vmem>>, vector<1x8xf32>
    tpu.vector_store %arg10[%c0_29, %c0_30], %41 {strides = array<i32>} : memref<1x8xf32, #tpu.memory_space<vmem>>, vector<1x8xf32>,
    return
  }
  func.func @transform_0(%arg0: i32) -> (i32, i32) {
    %c0_i32 = arith.constant 0 : i32
    %c0_i32_0 = arith.constant 0 : i32
    return %c0_i32, %arg0 : i32, i32
  }
  func.func @transform_1(%arg0: i32) -> (i32, i32) {
    %c0_i32 = arith.constant 0 : i32
    %c0_i32_0 = arith.constant 0 : i32
    %c0_i32_1 = arith.constant 0 : i32
    return %c0_i32, %c0_i32_0 : i32, i32
  }
  func.func @transform_2(%arg0: i32) -> (i32, i32) {
    %c0_i32 = arith.constant 0 : i32
    %c0_i32_0 = arith.constant 0 : i32
    %c0_i32_1 = arith.constant 0 : i32
    return %c0_i32, %c0_i32_0 : i32, i32
  }
  func.func @transform_3(%arg0: i32) -> (i32, i32) {
    %c0_i32 = arith.constant 0 : i32
    %c0_i32_0 = arith.constant 0 : i32
    %c0_i32_1 = arith.constant 0 : i32
    return %c0_i32, %c0_i32_0 : i32, i32
  }
  func.func @transform_4(%arg0: i32) -> (i32, i32) {
    %c0_i32 = arith.constant 0 : i32
    %c0_i32_0 = arith.constant 0 : i32
    %c0_i32_1 = arith.constant 0 : i32
    return %c0_i32, %c0_i32_0 : i32, i32
  }
  func.func @transform_5(%arg0: i32) -> (i32, i32) {
    %c0_i32 = arith.constant 0 : i32
    %c0_i32_0 = arith.constant 0 : i32
    %c0_i32_1 = arith.constant 0 : i32
    return %c0_i32, %c0_i32_0 : i32, i32
  }
  func.func @transform_6(%arg0: i32) -> (i32, i32) {
    %c0_i32 = arith.constant 0 : i32
    %c0_i32_0 = arith.constant 0 : i32
    %c0_i32_1 = arith.constant 0 : i32
    return %c0_i32, %c0_i32_0 : i32, i32
  }
  func.func @transform_7(%arg0: i32) -> (i32, i32) {
    %c0_i32 = arith.constant 0 : i32
    %c0_i32_0 = arith.constant 0 : i32
    %c0_i32_1 = arith.constant 0 : i32
    return %c0_i32, %c0_i32_0 : i32, i32
  }
  func.func @transform_8(%arg0: i32) -> (i32, i32) {
    %c0_i32 = arith.constant 0 : i32
    %c0_i32_0 = arith.constant 0 : i32
    %c0_i32_1 = arith.constant 0 : i32
    return %c0_i32, %c0_i32_0 : i32, i32
  }
  func.func @transform_9(%arg0: i32) -> (i32, i32) {
    %c0_i32 = arith.constant 0 : i32
    %c0_i32_0 = arith.constant 0 : i32
    return %c0_i32, %arg0 : i32, i32
  }
}

</mosaic_0001>

<bundles_post_ra>
// kernel: tpu_custom_call.1
= control target key start
LH: loop header
LB: loop body
LE: loop exit
PB: predicated region body
PF: predicated region fallthrough
CT: control target
= control target key end

     0   :  { %s384_s0 = inlined_call_operand.vmem [shape: f32[2,8], index: 0, kind: input, shape index: {}]   ;;  %s385_s1 = inlined_call_operand.vmem [shape: f32[10,2], index: 1, kind: input, shape index: {}]   ;;  %s386_s2 = inlined_call_operand.vmem [shape: f32[10,1], index: 2, kind: input, shape index: {}]   ;;  %s387_s3 = inlined_call_operand.vmem [shape: f32[10,10], index: 3, kind: input, shape index: {}]   ;;  %s388_s4 = inlined_call_operand.vmem [shape: f32[10,1], index: 4, kind: input, shape index: {}]   ;;  %s389_s5 = inlined_call_operand.vmem [shape: f32[8,10], index: 5, kind: input, shape index: {}]   ;;  %s390_s6 = inlined_call_operand.vmem [shape: f32[8,1], index: 6, kind: input, shape index: {}]   ;;  %s391_s7 = inlined_call_operand.vmem [shape: f32[1,8], index: 7, kind: input, shape index: {}]   ;;  %s392_s8 = inlined_call_operand.<no memory space> [shape: f32[1,1], index: 8, kind: input, shape index: {}]   ;;  %s393_s9 = inlined_call_operand.hbm [shape: f32[1,8], index: 9, kind: output, shape index: {}]  }
   0x1   :  { %v14_v0 = vstv %s392_s8 }
   0x2   :  { %15 = vst [vmem:[#allocation2] sm:$0x1] %v14_v0 }
   0x3   :  { %v35_v1 = vld [vmem:[%s384_s0] sm:$0x3]  ;;  %vm57_vm0 = vcmask 1041408   ;;  %vm50_vm1 = vcmask 15360   ;;  %v284_v3 = vmov 0  }
   0x4   :  { %v36_v2 = vld [vmem:[%s385_s1] sm:$0xff]  ;;  %234 = vmatpush.msk.msra.mxu0 %vm57_vm0, %v35_v1  ;;  %245 = vset.pattern.permute.xlu0 %v284_v3  ;;  %v39_v4 = vld [vmem:[%s386_s2 + $0x8] sm:$0x3] }
   0x5   :  { %235 = vmatmul.msk.f32.vlgmr.msra.gmra.mxu0 %vm50_vm1, %v36_v2  ;;  %47 = vperm.xlu0 %245, %v39_v4  }
   0x6   :  { %16 = vsyncpa [#allocation4], 0  ;;  %246 = vset.pattern.permute.xlu1 %v284_v3  ;;  %247 = vset.pattern.permute.xlu2 %v284_v3  ;;  %v37_v5 = vld [vmem:[%s385_s1 + $0x8] sm:$0x3]  ;;  %v38_v6 = vld [vmem:[%s386_s2] sm:$0xff]  ;;  %vm106_vm2 = vcmask 80896  }
   0x7   :  { %v95_v8 = vld [vmem:[%s388_s4 + $0x8] sm:$0x3]  ;;  %v94_v12 = vld [vmem:[%s388_s4] sm:$0xff]  ;;  %vm192_vm3 = vcmask 64512   ;;  %s225_s10 = sshll.u32 %s393_s9, 4  ;;  %vm216_vm4 = vcmask 57344   ;;  %s226_s10 = int_to_ptr.hbm [resolvable:$true] %s225_s10 }
   0x8   :  { %103 = vperm.xlu1 %246, %v95_v8   ;;  %v92_v23 = vld [vmem:[%s387_s3] sm:$0xff]  ;;  %v93_v24 = vld [vmem:[%s387_s3 + $0x8] sm:$0x3] }
   0x9   :  { %v148_v26 = vld [vmem:[%s390_s6] sm:$0xff] }
   0xa   :  { %151 = vperm.xlu2 %247, %v148_v26   ;;  %v185_v29 = vld [vmem:[#allocation2] sm:$0x1] }
   0xb   :  { %v147_v41 = vld [vmem:[%s389_s5] sm:$0xff]  ;;  %s285_s5 = smov [#allocation3]  }
   0xc   :  { %v184_v49 = vld [vmem:[%s391_s7] sm:$0x1]  ;;  %s223_s28 = sshll.u32 %s285_s5, 4  ;;  %s224_s28 = int_to_ptr.vmem [resolvable:$true] %s223_s28 }
   0xd   :  { %236 = vmatmul.msk.f32.gmra.mxu0 %vm50_vm1, %v37_v5  ;;  %42 = vperm.xlu0 %245, %v38_v6  }
  0x10   :  { %98 = vperm.xlu1 %246, %v94_v12  }
  0x12   :  { %188 = vperm.xlu2 %247, %v185_v29  }
  0x64   :  { %v152_v42 = vpop.permute.xlu2 %151 }
  0x6c   :  { %v189_v50 = vpop.permute.xlu2 %188 }
  0x6d   :  { %v191_v51 = vperm.slane %v189_v50, 0 }
  0x77   :  { %v48_v7 = vpop.permute.xlu0 %47 }
  0x7a   :  { %v104_v25 = vpop.permute.xlu1 %103 }
  0x7f   :  { %v43_v9 = vpop.permute.xlu0 %42 }
  0x82   :  { %v78_v10 = vpop.f32.mrf.mxu0  ;;  %v99_v27 = vpop.permute.xlu1 %98 }
  0x83   :  { %v79_v11 = vadd.f32 %v78_v10, %v43_v9 }
  0x85   :  { %v84_v13 = vmul.f32 0.5, %v79_v11 }
  0x87   :  { %248 = vtanh.f32 %v84_v13 }
  0x8a   :  { %v81_v14 = vpop.f32.mrf.mxu0 }
  0x8b   :  { %v82_v15 = vadd.f32 %v81_v14, %v48_v7 }
  0x8d   :  { %v85_v16 = vmul.f32 0.5, %v82_v15  ;;  %v249_v17 = vpop.eup %248 }
  0x8e   :  { %v88_v20 = vmul.f32 0.5, %v249_v17 }
  0x8f   :  { %250 = vtanh.f32 %v85_v16 }
  0x90   :  { %v90_v22 = vadd.f32 0.5, %v88_v20 }
  0x95   :  { %v251_v18 = vpop.eup %250 }
  0x96   :  { %v89_v19 = vmul.f32 0.5, %v251_v18 }
  0x98   :  { %v91_v21 = vadd.f32 0.5, %v89_v19 }
  0x9a   :  { %237 = vmatpush.msk.msra.mxu1 %vm57_vm0, %v91_v21 }
  0x9c   :  { %131 = vmatpush.msra.mxu1 %v90_v22 }
  0x9d   :  { %238 = vmatmul.msk.f32.vlgmr.msra.gmra.mxu1 %vm106_vm2, %v92_v23 }
  0xa5   :  { %239 = vmatmul.msk.f32.gmra.mxu1 %vm106_vm2, %v93_v24 }
 0x11a   :  { %v133_v28 = vpop.f32.mrf.mxu1 }
 0x11b   :  { %v134_v30 = vadd.f32 %v133_v28, %v99_v27 }
 0x11d   :  { %v139_v31 = vmul.f32 0.5, %v134_v30 }
 0x11f   :  { %252 = vtanh.f32 %v139_v31 }
 0x122   :  { %v136_v32 = vpop.f32.mrf.mxu1 }
 0x123   :  { %v137_v33 = vadd.f32 %v136_v32, %v104_v25 }
 0x125   :  { %v140_v34 = vmul.f32 0.5, %v137_v33  ;;  %v253_v35 = vpop.eup %252 }
 0x126   :  { %v143_v38 = vmul.f32 0.5, %v253_v35 }
 0x127   :  { %254 = vtanh.f32 %v140_v34 }
 0x128   :  { %v145_v40 = vadd.f32 0.5, %v143_v38 }
 0x12d   :  { %v255_v36 = vpop.eup %254 }
 0x12e   :  { %v144_v37 = vmul.f32 0.5, %v255_v36 }
 0x130   :  { %v146_v39 = vadd.f32 0.5, %v144_v37 }
 0x132   :  { %240 = vmatpush.msk.msra.mxu2 %vm57_vm0, %v146_v39 }
 0x134   :  { %175 = vmatpush.msra.mxu2 %v145_v40 }
 0x135   :  { %241 = vmatmul.msk.f32.vlgmr.msra.gmra.mxu2 %vm106_vm2, %v147_v41 }
 0x1b8   :  { %v177_v43 = vpop.f32.mrf.mxu2 }
 0x1b9   :  { %v178_v44 = vadd.f32 %v177_v43, %v152_v42 }
 0x1bb   :  { %v180_v45 = vmul.f32 0.5, %v178_v44 }
 0x1bd   :  { %256 = vtanh.f32 %v180_v45 }
 0x1c3   :  { %v257_v46 = vpop.eup %256 }
 0x1c4   :  { %v182_v47 = vmul.f32 0.5, %v257_v46 }
 0x1c6   :  { %v183_v48 = vadd.f32 0.5, %v182_v47 }
 0x1c8   :  { %211 = vmatpush.msra.mxu3 %v183_v48 }
 0x1c9   :  { %242 = vmatmul.msk.f32.vlgmr.msra.gmra.mxu3 %vm192_vm3, %v184_v49 }
 0x24c   :  { %v213_v52 = vpop.f32.mrf.mxu3 }
 0x24d   :  { %v214_v53 = vadd.f32 %v213_v52, %v191_v51 }
 0x24f   :  { %217 = vst.msk [vmem:[#allocation3] sm:$0x1] %vm216_vm4, %v214_v53 }
 0x250   :  { %228 = dma.vmem_to_hbm [thread:$0]  %s224_s28, 16, %s226_s10, [#allocation4]  }
 0x251   :  { %282 = dma.done.wait [#allocation4], 16  }
 0x252   :  { %283 = vsyncadd [#allocation4], 4294967280 }
 0x253   :  { %233 = vsyncpa [#allocation4], 1 }

</bundles_post_ra>
